<compile_context>
chip_gen: v6e
topology: v6e:2x2x1
jax: 0.10.0
libtpu: 0.0.40
codegen_flags: <defaults>
</compile_context>

<pallas_src>
import functools
import math

import jax
import jax.numpy as jnp
from jax.experimental import pallas as pl
from jax.experimental.pallas import tpu as pltpu


def _round_up(x, m):
    return ((x + m - 1) // m) * m


def _choose_block_m(batch):
    """Batch-tile size: single tile for tiny batches; otherwise tiles of at most
    ~1024 rows with an EVEN tile count (balanced across v7x's two TensorCores)."""
    if batch <= 128:
        return _round_up(max(batch, 1), 8)
    n = -(-batch // 1024)          # number of <=1024-row tiles
    if n % 2:
        n += 1                     # even grid -> balanced "parallel" split on v7x
    return _round_up(-(-batch // n), 8)


# ---------------------------------------------------------------------------
# Kernel: whole MLP on one batch tile; all parameters live in one VMEM-resident
# packed slab (constant index_map), output is a lane-dense (block_m, 128) slab.
# ---------------------------------------------------------------------------
def _policy_kernel(x_ref, p_ref, out_ref, *, sd_pad, hidden, action_dim):
    W = hidden

    # static, sublane-aligned slices of the packed parameter slab
    w1 = p_ref[0:sd_pad, :]
    w2 = p_ref[sd_pad:sd_pad + W, :]
    wh = p_ref[sd_pad + W:sd_pad + 2 * W, :]
    bofs = sd_pad + 2 * W
    b1 = p_ref[bofs:bofs + 1, :]
    b2 = p_ref[bofs + 1:bofs + 2, :]
    bh = p_ref[bofs + 2:bofs + 3, :]

    x = x_ref[...]

    # hidden layer 1: tanh(x @ W1 + b1)
    h = jnp.tanh(jnp.dot(x, w1, preferred_element_type=jnp.float32) + b1)
    # hidden layer 2: tanh(h @ W2 + b2)
    h = jnp.tanh(jnp.dot(h, w2, preferred_element_type=jnp.float32) + b2)

    # fused heads: one lane-dense (block_m, 128) matmul; columns [0:A) = mean head,
    # [A:2A) = std head, rest is zero padding (sliced off in the wrapper).
    z = jnp.dot(h, wh, preferred_element_type=jnp.float32) + bh

    col = jax.lax.broadcasted_iota(jnp.int32, z.shape, 1)
    is_mean = col < action_dim

    # Single exp pass for both heads:
    #   mean columns: tanh(z) = 1 - 2/(exp(2z)+1)   (2z clamped so exp stays finite)
    #   std  columns: exp(z)
    arg = jnp.where(is_mean, jnp.minimum(2.0 * z, 80.0), z)
    u = jnp.exp(arg)
    d = u + 1.0
    r = pl.reciprocal(d, approx=True)     # EUP approx rcp (cheap)
    r = r * (2.0 - d * r)                 # Newton step #1 (VALU, free slack)
    r = r * (2.0 - d * r)                 # Newton step #2 -> ~f32 accuracy
    out_ref[...] = jnp.where(is_mean, 1.0 - 2.0 * r, u)


# ---------------------------------------------------------------------------
# Parameter init (mimics torch.nn.Linear default + the 0.1 / 0.0 head scaling)
# ---------------------------------------------------------------------------
def init_policy_params(key, state_dim, action_dim, hidden_size=(128, 128)):
    keys = jax.random.split(key, 8)

    def linear_init(kw, kb, fan_in, fan_out):
        bound = 1.0 / math.sqrt(fan_in)
        w = jax.random.uniform(kw, (fan_in, fan_out), jnp.float32, -bound, bound)
        b = jax.random.uniform(kb, (1, fan_out), jnp.float32, -bound, bound)
        return w, b

    h1, h2 = hidden_size
    w1, b1 = linear_init(keys[0], keys[1], state_dim, h1)
    w2, b2 = linear_init(keys[2], keys[3], h1, h2)
    wm, bm = linear_init(keys[4], keys[5], h2, action_dim)
    ws, bs = linear_init(keys[6], keys[7], h2, action_dim)

    # Policy.__init__: action_mean/std weights *= 0.1, biases *= 0.0
    wm = wm * 0.1
    bm = bm * 0.0
    ws = ws * 0.1
    bs = bs * 0.0

    return {"w1": w1, "b1": b1, "w2": w2, "b2": b2,
            "wm": wm, "bm": bm, "ws": ws, "bs": bs}


# ---------------------------------------------------------------------------
# One-time packing: everything (w1, w2, fused head, biases) into ONE zero-padded
# sublane-aligned f32 slab of shape (sd_pad + 2*128 + 8, 128).
# ---------------------------------------------------------------------------
def pack_policy_params(params):
    w1, b1 = params["w1"], params["b1"]
    w2, b2 = params["w2"], params["b2"]
    wm, bm = params["wm"], params["bm"]
    ws, bs = params["ws"], params["bs"]

    state_dim, h1 = w1.shape
    h2 = w2.shape[1]
    action_dim = wm.shape[1]
    assert h1 == h2 == 128, "packing assumes hidden width 128 (module default)"
    assert 2 * action_dim <= h2, "fused head assumes 2*action_dim <= hidden width"
    W = h2
    sd_pad = _round_up(state_dim, 8)

    rows = sd_pad + 2 * W + 8          # each segment starts on an 8-row boundary
    p = jnp.zeros((rows, W), jnp.float32)
    p = p.at[:state_dim, :].set(w1)
    p = p.at[sd_pad:sd_pad + W, :].set(w2)
    p = p.at[sd_pad + W:sd_pad + 2 * W, :action_dim].set(wm)
    p = p.at[sd_pad + W:sd_pad + 2 * W, action_dim:2 * action_dim].set(ws)
    bofs = sd_pad + 2 * W
    p = p.at[bofs, :].set(b1.reshape(-1))
    p = p.at[bofs + 1, :].set(b2.reshape(-1))
    p = p.at[bofs + 2, :action_dim].set(bm.reshape(-1))
    p = p.at[bofs + 2, action_dim:2 * action_dim].set(bs.reshape(-1))

    return {"p": p, "state_dim": state_dim, "sd_pad": sd_pad,
            "hidden": W, "action_dim": action_dim}


# ---------------------------------------------------------------------------
# Wrapper: 1-D batch grid, VMEM-resident packed params, lane-dense output slab.
# ---------------------------------------------------------------------------
def policy_forward(x, packed, *, block_m=None):
    A = packed["action_dim"]
    W = packed["hidden"]
    sd = packed["state_dim"]
    sd_pad = packed["sd_pad"]
    p = packed["p"]
    R = p.shape[0]

    B = x.shape[0]
    assert x.shape[1] == sd

    if block_m is None:
        block_m = _choose_block_m(B)
    Bp = _round_up(B, block_m)
    if (Bp != B) or (sd_pad != sd):
        x = jnp.pad(x, ((0, Bp - B), (0, sd_pad - sd)))

    grid = (Bp // block_m,)
    kernel = functools.partial(_policy_kernel, sd_pad=sd_pad, hidden=W,
                               action_dim=A)

    flops = 2 * Bp * (sd_pad * W + W * W + W * W)
    # 2 tanh passes (hidden) + exp pass + approx-rcp pass on the head slab
    transcendentals = Bp * (2 * W + 2 * W)
    bytes_accessed = 4 * (Bp * sd_pad + p.size + Bp * W)

    # NOTE: default Buffered(2) pipelining; bump x/out to pl.Buffered(3) only if an
    # xprof trace at large block_m shows exposed DMA.
    out = pl.pallas_call(
        kernel,
        out_shape=jax.ShapeDtypeStruct((Bp, W), jnp.float32),
        grid=grid,
        in_specs=[
            pl.BlockSpec((block_m, sd_pad), lambda i: (i, 0)),   # x: tiled over batch
            pl.BlockSpec((R, W), lambda i: (0, 0)),              # params: VMEM-resident
        ],
        out_specs=pl.BlockSpec((block_m, W), lambda i: (i, 0)),  # lane-dense slab
        compiler_params=pltpu.CompilerParams(
            dimension_semantics=("parallel",)),
        cost_estimate=pl.CostEstimate(
            flops=flops,
            transcendentals=transcendentals,
            bytes_accessed=bytes_accessed),
    )(x, p)

    mean = out[:B, :A]
    std = out[:B, A:2 * A]
    return mean, std


# ---------------------------------------------------------------------------
# Pure-JAX reference (uses the original, unpacked params)
# ---------------------------------------------------------------------------
def _reference_forward(x, p):
    h = jnp.tanh(x @ p["w1"] + p["b1"])
    h = jnp.tanh(h @ p["w2"] + p["b2"])
    mean = jnp.tanh(h @ p["wm"] + p["bm"])
    std = jnp.exp(h @ p["ws"] + p["bs"])
    return mean, std


def _check(x, params, packed, label):
    mean, std = policy_forward(x, packed)
    jax.block_until_ready((mean, std))
    ref_mean, ref_std = _reference_forward(x, params)
    B = x.shape[0]
    A = packed["action_dim"]
    assert mean.shape == (B, A), label
    assert std.shape == (B, A), label
    assert jnp.allclose(mean, ref_mean, atol=2e-4, rtol=2e-4), label
    assert jnp.allclose(std, ref_std, atol=1e-4, rtol=1e-4), label


if __name__ == "__main__":
    key = jax.random.PRNGKey(0)
    k_param, k1, k2, k3 = jax.random.split(key, 4)

    state_dim = 32
    action_dim = 8

    params = init_policy_params(k_param, state_dim, action_dim, hidden_size=(128, 128))
    packed = pack_policy_params(params)

    # tiny batch: single grid step, latency path
    x_small = jax.random.normal(k1, (8, state_dim), jnp.float32)
    _check(x_small, params, packed, "small")

    # moderate non-multiple batch: padding + exactly 2 balanced tiles (v7x split)
    x_mid = jax.random.normal(k2, (300, state_dim), jnp.float32)
    _check(x_mid, params, packed, "mid")

    # large batch: big (~632-row) tiles, even multi-step grid
    x_big = jax.random.normal(k3, (2500, state_dim), jnp.float32)
    _check(x_big, params, packed, "big")

    print("KERNEL_OK")
</pallas_src>

<mosaic_0001>
module attributes {stable_mosaic.version = 11 : i64} {
  func.func @_policy_kernel(%arg0: i32, %arg1: memref<8x32xf32, #tpu.memory_space<vmem>>, %arg2: memref<296x128xf32, #tpu.memory_space<vmem>>, %arg3: memref<8x128xf32, #tpu.memory_space<vmem>>) attributes {dimension_semantics = [#tpu.dimension_semantics<parallel>], iteration_bounds = array<i64: 1>, scalar_prefetch = 0 : i64, scratch_operands = 0 : i64, tpu.core_type = #tpu.core_type<tc>, window_params = [{transform_indices = @transform_0, window_bounds = array<i64: 8, 32>}, {pipeline_mode = #tpu.pipeline_mode<synchronous>, transform_indices = @transform_1, window_bounds = array<i64: 296, 128>}, {transform_indices = @transform_2, window_bounds = array<i64: 8, 128>}]} {
    %c0 = arith.constant 0 : index
    %c0_0 = arith.constant 0 : index
    %0 = vector.load %arg2[%c0, %c0_0] : memref<296x128xf32, #tpu.memory_space<vmem>>, vector<32x128xf32>
    %c32 = arith.constant 32 : index
    %c0_1 = arith.constant 0 : index
    %1 = vector.load %arg2[%c32, %c0_1] : memref<296x128xf32, #tpu.memory_space<vmem>>, vector<128x128xf32>
    %c160 = arith.constant 160 : index
    %c0_2 = arith.constant 0 : index
    %2 = vector.load %arg2[%c160, %c0_2] : memref<296x128xf32, #tpu.memory_space<vmem>>, vector<128x128xf32>
    %c288 = arith.constant 288 : index
    %c0_3 = arith.constant 0 : index
    %3 = vector.load %arg2[%c288, %c0_3] : memref<296x128xf32, #tpu.memory_space<vmem>>, vector<1x128xf32>
    %c289 = arith.constant 289 : index
    %c0_4 = arith.constant 0 : index
    %4 = vector.load %arg2[%c289, %c0_4] : memref<296x128xf32, #tpu.memory_space<vmem>>, vector<1x128xf32>
    %c290 = arith.constant 290 : index
    %c0_5 = arith.constant 0 : index
    %5 = vector.load %arg2[%c290, %c0_5] : memref<296x128xf32, #tpu.memory_space<vmem>>, vector<1x128xf32>
    %c0_6 = arith.constant 0 : index
    %c0_7 = arith.constant 0 : index
    %6 = vector.load %arg1[%c0_6, %c0_7] : memref<8x32xf32, #tpu.memory_space<vmem>>, vector<8x32xf32>
    %cst = arith.constant dense<0.000000e+00> : vector<8x128xf32>
    %7 = tpu.matmul %6, %0, %cst {dimension_numbers = #tpu.dot_dimension_numbers<[1], [0], [0], [1], [0, 0, 1, 1], [], []>} : vector<8x32xf32>, vector<32x128xf32>, vector<8x128xf32> -> vector<8x128xf32>
    %8 = vector.broadcast %3 : vector<1x128xf32> to vector<8x128xf32>
    %9 = arith.addf %7, %8 : vector<8x128xf32>
    %10 = math.tanh %9 : vector<8x128xf32>
    %cst_8 = arith.constant dense<0.000000e+00> : vector<8x128xf32>
    %11 = tpu.matmul %10, %1, %cst_8 {dimension_numbers = #tpu.dot_dimension_numbers<[1], [0], [0], [1], [0, 0, 1, 1], [], []>} : vector<8x128xf32>, vector<128x128xf32>, vector<8x128xf32> -> vector<8x128xf32>
    %12 = vector.broadcast %4 : vector<1x128xf32> to vector<8x128xf32>
    %13 = arith.addf %11, %12 : vector<8x128xf32>
    %14 = math.tanh %13 : vector<8x128xf32>
    %cst_9 = arith.constant dense<0.000000e+00> : vector<8x128xf32>
    %15 = tpu.matmul %14, %2, %cst_9 {dimension_numbers = #tpu.dot_dimension_numbers<[1], [0], [0], [1], [0, 0, 1, 1], [], []>} : vector<8x128xf32>, vector<128x128xf32>, vector<8x128xf32> -> vector<8x128xf32>
    %16 = vector.broadcast %5 : vector<1x128xf32> to vector<8x128xf32>
    %17 = arith.addf %15, %16 : vector<8x128xf32>
    %18 = tpu.iota {dimensions = array<i32: 1>} : vector<8x128xi32>
    %c8_i32 = arith.constant 8 : i32
    %19 = vector.broadcast %c8_i32 : i32 to vector<8x128xi32>
    %20 = arith.cmpi slt, %18, %19 : vector<8x128xi32>
    %cst_10 = arith.constant 2.000000e+00 : f32
    %21 = vector.broadcast %cst_10 : f32 to vector<8x128xf32>
    %22 = arith.mulf %21, %17 : vector<8x128xf32>
    %cst_11 = arith.constant 8.000000e+01 : f32
    %23 = vector.broadcast %cst_11 : f32 to vector<8x128xf32>
    %24 = arith.minimumf %22, %23 : vector<8x128xf32>
    %25 = arith.select %20, %24, %17 : vector<8x128xi1>, vector<8x128xf32>
    %26 = math.exp %25 : vector<8x128xf32>
    %cst_12 = arith.constant 1.000000e+00 : f32
    %27 = vector.broadcast %cst_12 : f32 to vector<8x128xf32>
    %28 = arith.addf %26, %27 : vector<8x128xf32>
    %29 = tpu.reciprocal %28 {approx = true} : vector<8x128xf32> -> vector<8x128xf32>
    %30 = arith.mulf %28, %29 : vector<8x128xf32>
    %cst_13 = arith.constant 2.000000e+00 : f32
    %31 = vector.broadcast %cst_13 : f32 to vector<8x128xf32>
    %32 = arith.subf %31, %30 : vector<8x128xf32>
    %33 = arith.mulf %29, %32 : vector<8x128xf32>
    %34 = arith.mulf %28, %33 : vector<8x128xf32>
    %cst_14 = arith.constant 2.000000e+00 : f32
    %35 = vector.broadcast %cst_14 : f32 to vector<8x128xf32>
    %36 = arith.subf %35, %34 : vector<8x128xf32>
    %37 = arith.mulf %33, %36 : vector<8x128xf32>
    %cst_15 = arith.constant 2.000000e+00 : f32
    %38 = vector.broadcast %cst_15 : f32 to vector<8x128xf32>
    %39 = arith.mulf %38, %37 : vector<8x128xf32>
    %cst_16 = arith.constant 1.000000e+00 : f32
    %40 = vector.broadcast %cst_16 : f32 to vector<8x128xf32>
    %41 = arith.subf %40, %39 : vector<8x128xf32>
    %42 = arith.select %20, %41, %26 : vector<8x128xi1>, vector<8x128xf32>
    %c0_17 = arith.constant 0 : index
    %c0_18 = arith.constant 0 : index
    %43 = vector.load %arg3[%c0_17, %c0_18] : memref<8x128xf32, #tpu.memory_space<vmem>>, vector<8x128xf32>
    tpu.vector_store %arg3[%c0_17, %c0_18], %42 {strides = array<i32>} : memref<8x128xf32, #tpu.memory_space<vmem>>, vector<8x128xf32>,
    return
  }
  func.func @transform_0(%arg0: i32) -> (i32, i32) {
    %c0_i32 = arith.constant 0 : i32
    %c0_i32_0 = arith.constant 0 : i32
    return %arg0, %c0_i32 : i32, i32
  }
  func.func @transform_1(%arg0: i32) -> (i32, i32) {
    %c0_i32 = arith.constant 0 : i32
    %c0_i32_0 = arith.constant 0 : i32
    %c0_i32_1 = arith.constant 0 : i32
    return %c0_i32, %c0_i32_0 : i32, i32
  }
  func.func @transform_2(%arg0: i32) -> (i32, i32) {
    %c0_i32 = arith.constant 0 : i32
    %c0_i32_0 = arith.constant 0 : i32
    return %arg0, %c0_i32 : i32, i32
  }
}

</mosaic_0001>

<bundles_post_ra>
// kernel: tpu_custom_call.1
= control target key start
LH: loop header
LB: loop body
LE: loop exit
PB: predicated region body
PF: predicated region fallthrough
CT: control target
= control target key end

     0   :  { %7 = vsyncpa [#allocation3], 0  ;;  %s622_s0 = inlined_call_operand.hbm [shape: f32[8,32], index: 0, kind: input, shape index: {}]   ;;  %s623_s1 = inlined_call_operand.hbm [shape: f32[296,128], index: 1, kind: input, shape index: {}]   ;;  %s624_s2 = inlined_call_operand.hbm [shape: f32[8,128], index: 2, kind: output, shape index: {}]  }
   0x1   :  { %8 = vsyncpa [#allocation6], 0 }
   0x2   :  { %9 = vsyncpa [#allocation4], 0  ;;  %s547_s9 = smov [#allocation2]   ;;  %s548_s11 = smov [#allocation5]  }
   0x3   :  { %s16_s10 = sshll.u32 %s547_s9, 4  ;;  %s25_s12 = sshll.u32 %s548_s11, 4  ;;  %s17_s10 = int_to_ptr.vmem [resolvable:$true] %s16_s10  ;;  %s26_s12 = int_to_ptr.vmem [resolvable:$true] %s25_s12 }
   0x4   :  { %s489_s13 = scalar_lea.vmem %s17_s10, 128  ;;  %p494_p1 = scmp.lt.s32.totalorder %s17_s10, %s17_s10 }
   0x5   :  { %p490_p0 = scmp.ne.s32.totalorder %s17_s10, %s489_s13  ;;  %p495_p2 = scmp.lt.s32.totalorder %s489_s13, %s489_s13 }
   0x7   :  { %p496_p3 = por %p495_p2, %p494_p1 }
   0x9   :  { %p497_p4 = pnand %p496_p3, %p490_p0 }
   0xb   :  { %500 = shalt.err (!%p497_p4)
}
   0xc   :  { %19 = dma.hbm_to_vmem [thread:$0]  %s622_s0, 128, %s17_s10, [#allocation3]  }
   0xd   :  { %s509_s16 = scalar_lea.vmem %s26_s12, 4736  ;;  %p514_p6 = scmp.lt.s32.totalorder %s26_s12, %s26_s12 }
   0xe   :  { %p510_p5 = scmp.ne.s32.totalorder %s26_s12, %s509_s16  ;;  %p515_p7 = scmp.lt.s32.totalorder %s509_s16, %s509_s16 }
  0x10   :  { %p516_p8 = por %p515_p7, %p514_p6 }
  0x12   :  { %p517_p9 = pnand %p516_p8, %p510_p5 }
  0x14   :  { %520 = shalt.err (!%p517_p9)
}
  0x15   :  { %s549_s17 = smov 128   ;;  %s550_s18 = smov 8  }
  0x16   :  { %31 = dma.hbm_to_vmem [thread:$0]  %s623_s1, 4736, %s26_s12, [#allocation6], %s549_s17, %s549_s17, %s550_s18  }
  0x17   :  { %541 = dma.done.wait [#allocation3], 128  }
  0x18   :  { %542 = vsyncadd [#allocation3], 4294967168 }
  0x19   :  { %543 = dma.done.wait [#allocation6], 4736  }
  0x1a   :  { %544 = vsyncadd [#allocation6], 4294962560  ;;  %v551_v0 = vmov 0.0   ;;  %vm552_vm0 = vmmov 0   ;;  %v41_v1 = vld [vmem:[#allocation5 + $0x18] sm:$0xff]  ;;  %v40_v2 = vld [vmem:[#allocation5 + $0x10] sm:$0xff]  ;;  %v306_v48 = vlaneseq }
  0x1b   :  { %385 = vmatprep.subr.mxu0 %v551_v0  ;;  %393 = vmatprep.mubr.msk.f32.mxu0 %vm552_vm0, %v551_v0  ;;  %v57_v3 = vld [vmem:[#allocation5 + $0x98] sm:$0xff]  ;;  %v39_v4 = vld [vmem:[#allocation5 + $0x8] sm:$0xff]  ;;  %v56_v5 = vld [vmem:[#allocation5 + $0x90] sm:$0xff]  ;;  %vm82_vm1 = vcmask 261120   ;;  %s553_s0 = smov [#allocation7]  }
  0x1c   :  { %396 = vmatprep.subr.mxu1 %v551_v0  ;;  %428 = vmatprep.mubr.msk.f32.mxu1 %vm552_vm0, %v551_v0  ;;  %v55_v6 = vld [vmem:[#allocation5 + $0x88] sm:$0xff]  ;;  %v38_v7 = vld [vmem:[#allocation5] sm:$0xff]  ;;  %v77_v8 = vld [vmem:[#allocation2] sm:$0xff]  ;;  %v307_v51 = vand.u32 127, %v306_v48  ;;  %s332_s1 = sshll.u32 %s553_s0, 4  ;;  %s333_s1 = int_to_ptr.vmem [resolvable:$true] %s332_s1 }
  0x1d   :  { %386 = vmatpush3.msra.mxu0 %v41_v1  ;;  %397 = vmatpush3.msra.mxu1 %v57_v3  ;;  %v54_v9 = vld [vmem:[#allocation5 + $0x80] sm:$0xff]  ;;  %v53_v10 = vld [vmem:[#allocation5 + $0x78] sm:$0xff]  ;;  %v52_v11 = vld [vmem:[#allocation5 + $0x70] sm:$0xff]  ;;  %s521_s21 = scalar_lea.vmem %s333_s1, 128  ;;  %p526_p11 = scmp.lt.s32.totalorder %s333_s1, %s333_s1 }
  0x1e   :  { %387 = vmatprep.subr.mxu0 %v551_v0  ;;  %398 = vmatprep.subr.mxu1 %v551_v0  ;;  %v51_v12 = vld [vmem:[#allocation5 + $0x68] sm:$0xff]  ;;  %v50_v13 = vld [vmem:[#allocation5 + $0x60] sm:$0xff]  ;;  %v49_v14 = vld [vmem:[#allocation5 + $0x58] sm:$0xff]  ;;  %vm308_vm2 = vcmp.lt.s32.totalorder %v307_v51, 8  ;;  %p522_p10 = scmp.ne.s32.totalorder %s333_s1, %s521_s21  ;;  %p527_p12 = scmp.lt.s32.totalorder %s521_s21, %s521_s21 }
  0x1f   :  { %388 = vmatpush3.msra.mxu0 %v40_v2  ;;  %399 = vmatpush3.msra.mxu1 %v56_v5  ;;  %v48_v15 = vld [vmem:[#allocation5 + $0x50] sm:$0xff]  ;;  %v47_v16 = vld [vmem:[#allocation5 + $0x48] sm:$0xff]  ;;  %v46_v17 = vld [vmem:[#allocation5 + $0x40] sm:$0xff] }
  0x20   :  { %389 = vmatprep.subr.mxu0 %v551_v0  ;;  %400 = vmatprep.subr.mxu1 %v551_v0  ;;  %v45_v18 = vld [vmem:[#allocation5 + $0x38] sm:$0xff]  ;;  %v44_v19 = vld [vmem:[#allocation5 + $0x30] sm:$0xff]  ;;  %v43_v20 = vld [vmem:[#allocation5 + $0x28] sm:$0xff]  ;;  %p528_p13 = por %p527_p12, %p526_p11 }
  0x21   :  { %390 = vmatpush3.msra.mxu0 %v39_v4  ;;  %401 = vmatpush3.msra.mxu1 %v55_v6  ;;  %v42_v21 = vld [vmem:[#allocation5 + $0x20] sm:$0xff]  ;;  %v73_v22 = vld [vmem:[#allocation5 + $0x118] sm:$0xff]  ;;  %v72_v23 = vld [vmem:[#allocation5 + $0x110] sm:$0xff] }
  0x22   :  { %391 = vmatprep.subr.mxu0 %v551_v0  ;;  %402 = vmatprep.subr.mxu1 %v551_v0  ;;  %v71_v24 = vld [vmem:[#allocation5 + $0x108] sm:$0xff]  ;;  %v70_v25 = vld [vmem:[#allocation5 + $0x100] sm:$0xff]  ;;  %v69_v26 = vld [vmem:[#allocation5 + $0xf8] sm:$0xff]  ;;  %p529_p0 = pnand %p528_p13, %p522_p10 }
  0x23   :  { %392 = vmatpush3.msra.mxu0 %v38_v7  ;;  %403 = vmatpush3.msra.mxu1 %v54_v9  ;;  %v68_v27 = vld [vmem:[#allocation5 + $0xf0] sm:$0xff]  ;;  %v67_v28 = vld [vmem:[#allocation5 + $0xe8] sm:$0xff]  ;;  %v342_v29 = vld [vmem:[#allocation5 + $0x120] ss:$0 sm:$0xff] }
  0x24   :  { %394 = vmatmul.mubr.msk.f32.vlgmr.msra.gmra.mxu0 %vm82_vm1, %v77_v8  ;;  %404 = vmatprep.subr.mxu1 %v551_v0  ;;  %v66_v34 = vld [vmem:[#allocation5 + $0xe0] sm:$0xff]  ;;  %v65_v35 = vld [vmem:[#allocation5 + $0xd8] sm:$0xff]  ;;  %v64_v36 = vld [vmem:[#allocation5 + $0xd0] sm:$0xff] }
  0x25   :  { %431 = vmatprep.subr.mxu0 %v551_v0  ;;  %405 = vmatpush3.msra.mxu1 %v53_v10  ;;  %v63_v37 = vld [vmem:[#allocation5 + $0xc8] sm:$0xff]  ;;  %v62_v38 = vld [vmem:[#allocation5 + $0xc0] sm:$0xff]  ;;  %v61_v39 = vld [vmem:[#allocation5 + $0xb8] sm:$0xff] }
  0x26   :  { %463 = vmatprep.mubr.msk.f32.mxu0 %vm552_vm0, %v551_v0  ;;  %406 = vmatprep.subr.mxu1 %v551_v0  ;;  %v60_v40 = vld [vmem:[#allocation5 + $0xb0] sm:$0xff]  ;;  %v59_v41 = vld [vmem:[#allocation5 + $0xa8] sm:$0xff]  ;;  %v58_v42 = vld [vmem:[#allocation5 + $0xa0] sm:$0xff] }
  0x27   :  { %407 = vmatpush3.msra.mxu1 %v52_v11  ;;  %432 = vmatpush3.msra.mxu0 %v73_v22  ;;  %v344_v43 = vld [vmem:[#allocation5 + $0x121] ss:$0 sm:$0xff]  ;;  %v345_v49 = vld [vmem:[#allocation5 + $0x122] ss:$0 sm:$0xff] }
  0x28   :  { %408 = vmatprep.subr.mxu1 %v551_v0  ;;  %433 = vmatprep.subr.mxu0 %v551_v0 }
  0x29   :  { %409 = vmatpush3.msra.mxu1 %v51_v12  ;;  %434 = vmatpush3.msra.mxu0 %v72_v23 }
  0x2a   :  { %410 = vmatprep.subr.mxu1 %v551_v0  ;;  %435 = vmatprep.subr.mxu0 %v551_v0 }
  0x2b   :  { %411 = vmatpush3.msra.mxu1 %v50_v13  ;;  %436 = vmatpush3.msra.mxu0 %v71_v24 }
  0x2c   :  { %412 = vmatprep.subr.mxu1 %v551_v0  ;;  %437 = vmatprep.subr.mxu0 %v551_v0 }
  0x2d   :  { %413 = vmatpush3.msra.mxu1 %v49_v14  ;;  %438 = vmatpush3.msra.mxu0 %v70_v25 }
  0x2e   :  { %414 = vmatprep.subr.mxu1 %v551_v0  ;;  %439 = vmatprep.subr.mxu0 %v551_v0 }
  0x2f   :  { %415 = vmatpush3.msra.mxu1 %v48_v15  ;;  %440 = vmatpush3.msra.mxu0 %v69_v26 }
  0x30   :  { %416 = vmatprep.subr.mxu1 %v551_v0  ;;  %441 = vmatprep.subr.mxu0 %v551_v0 }
  0x31   :  { %417 = vmatpush3.msra.mxu1 %v47_v16  ;;  %442 = vmatpush3.msra.mxu0 %v68_v27 }
  0x32   :  { %418 = vmatprep.subr.mxu1 %v551_v0  ;;  %443 = vmatprep.subr.mxu0 %v551_v0 }
  0x33   :  { %419 = vmatpush3.msra.mxu1 %v46_v17  ;;  %444 = vmatpush3.msra.mxu0 %v67_v28 }
  0x34   :  { %420 = vmatprep.subr.mxu1 %v551_v0  ;;  %445 = vmatprep.subr.mxu0 %v551_v0 }
  0x35   :  { %421 = vmatpush3.msra.mxu1 %v45_v18  ;;  %446 = vmatpush3.msra.mxu0 %v66_v34 }
  0x36   :  { %422 = vmatprep.subr.mxu1 %v551_v0  ;;  %447 = vmatprep.subr.mxu0 %v551_v0 }
  0x37   :  { %423 = vmatpush3.msra.mxu1 %v44_v19  ;;  %448 = vmatpush3.msra.mxu0 %v65_v35 }
  0x38   :  { %424 = vmatprep.subr.mxu1 %v551_v0  ;;  %449 = vmatprep.subr.mxu0 %v551_v0 }
  0x39   :  { %425 = vmatpush3.msra.mxu1 %v43_v20  ;;  %450 = vmatpush3.msra.mxu0 %v64_v36 }
  0x3a   :  { %426 = vmatprep.subr.mxu1 %v551_v0  ;;  %451 = vmatprep.subr.mxu0 %v551_v0 }
  0x3b   :  { %427 = vmatpush3.msra.mxu1 %v42_v21  ;;  %452 = vmatpush3.msra.mxu0 %v63_v37 }
  0x3c   :  { %453 = vmatprep.subr.mxu0 %v551_v0 }
  0x3d   :  { %454 = vmatpush3.msra.mxu0 %v62_v38 }
  0x3e   :  { %455 = vmatprep.subr.mxu0 %v551_v0 }
  0x3f   :  { %456 = vmatpush3.msra.mxu0 %v61_v39 }
  0x40   :  { %457 = vmatprep.subr.mxu0 %v551_v0 }
  0x41   :  { %458 = vmatpush3.msra.mxu0 %v60_v40 }
  0x42   :  { %459 = vmatprep.subr.mxu0 %v551_v0 }
  0x43   :  { %460 = vmatpush3.msra.mxu0 %v59_v41 }
  0x44   :  { %461 = vmatprep.subr.mxu0 %v551_v0 }
  0x45   :  { %462 = vmatpush3.msra.mxu0 %v58_v42 }
  0xe4   :  { %v152_v30 = vpop.f32.mrf.mxu0 }
  0xe5   :  { %v153_v31 = vadd.f32 %v342_v29, %v152_v30 }
  0xe6   :  { %v395_v32 = vpop.f32.mrf.mxu0 }
  0xe7   :  { %473 = vtanh.f32 %v153_v31 }
  0xf4   :  { %v474_v33 = vpop.eup %473 }
  0xf5   :  { %429 = vmatmul.mubr.f32.vlgmr.msra.gmra.mxu1 %v474_v33 }
 0x1b5   :  { %v227_v44 = vpop.f32.mrf.mxu1 }
 0x1b6   :  { %v228_v45 = vadd.f32 %v344_v43, %v227_v44 }
 0x1b7   :  { %v430_v46 = vpop.f32.mrf.mxu1 }
 0x1b8   :  { %475 = vtanh.f32 %v228_v45 }
 0x1c5   :  { %v476_v47 = vpop.eup %475 }
 0x1c6   :  { %464 = vmatmul.mubr.f32.vlgmr.msra.gmra.mxu0 %v476_v47 }
 0x286   :  { %v302_v50 = vpop.f32.mrf.mxu0 }
 0x287   :  { %v303_v52 = vadd.f32 %v345_v49, %v302_v50 }
 0x288   :  { %v465_v53 = vpop.f32.mrf.mxu0 }
 0x289   :  { %v309_v54 = vmul.f32 2.0, %v303_v52 }
 0x28b   :  { %v310_v55 = vmin.f32 %v309_v54, 80.0 }
 0x28d   :  { %v311_v56 = vsel %vm308_vm2, %v310_v55, %v303_v52 }
 0x28e   :  { %v312_v57 = vmul.f32 1.442695, %v311_v56 }
 0x290   :  { %477 = vpow2.f32 %v312_v57 }
 0x29d   :  { %v478_v58 = vpop.eup %477 }
 0x29e   :  { %v314_v59 = vadd.f32 1.0, %v478_v58 }
 0x2a0   :  { %479 = vrcp.f32 %v314_v59 }
 0x2ad   :  { %v480_v60 = vpop.eup %479 }
 0x2ae   :  { %v316_v61 = vmul.f32 %v480_v60, %v314_v59 }
 0x2b0   :  { %v317_v62 = vsub.f32 2.0, %v316_v61 }
 0x2b2   :  { %v318_v63 = vmul.f32 %v480_v60, %v317_v62 }
 0x2b4   :  { %v319_v0 = vmul.f32 %v318_v63, %v314_v59 }
 0x2b6   :  { %v320_v1 = vsub.f32 2.0, %v319_v0 }
 0x2b8   :  { %v321_v2 = vmul.f32 %v320_v1, %v318_v63 }
 0x2ba   :  { %v322_v3 = vmul.f32 2.0, %v321_v2 }
 0x2bc   :  { %v323_v4 = vsub.f32 1.0, %v322_v3 }
 0x2be   :  { %v324_v5 = vsel %vm308_vm2, %v323_v4, %v478_v58 }
 0x2bf   :  { %325 = vst [vmem:[#allocation7] sm:$0xff] %v324_v5 }
 0x2c0   :  { %532 = shalt.err (!%p529_p0)
}
 0x2c1   :  { %335 = dma.vmem_to_hbm [thread:$0]  %s333_s1, 128, %s624_s2, [#allocation4]  }
 0x2c2   :  { %545 = dma.done.wait [#allocation4], 128  }
 0x2c3   :  { %546 = vsyncadd [#allocation4], 4294967168 }
 0x2c4   :  { %339 = vsyncpa [#allocation3], 1 }
 0x2c5   :  { %340 = vsyncpa [#allocation6], 1 }
 0x2c6   :  { %341 = vsyncpa [#allocation4], 1 }

</bundles_post_ra>
